<compile_context>
chip_gen: v7x
topology: tpu7x:2x2x1
jax: 0.10.0
libtpu: 0.0.40
codegen_flags: <defaults>
</compile_context>

<pallas_src>
import functools

import jax
import jax.numpy as jnp
from jax import lax
from jax.experimental import pallas as pl
from jax.experimental.pallas import tpu as pltpu

HALO = 16          # halo rows per L-tile (k=3 needs 2; 16 keeps bf16 blocks sublane-aligned)
MAX_TILE_L = 4096  # diminishing returns beyond this; keeps per-step latency bounded


def conv_pool_relu_kernel(x_ref, h_ref, w_ref, b_ref, o_ref):
    """One (batch, L-tile) grid step.

    x_ref: (1, T, Cp)     bf16   padded rows [li*T, (li+1)*T)
    h_ref: (1, HALO, Cp)  bf16   padded rows [(li+1)*T, (li+1)*T + HALO)
    w_ref: (3, Cp, Cp)    bf16   tap-major weights, W_k[c_in, c_out]
    b_ref: (1, Cp)        f32    bias
    o_ref: (1, T//2, Cp)  output dtype
    """
    t = x_ref.shape[1]
    cp = o_ref.shape[2]

    x = x_ref[0]                       # (T, Cp)    bf16
    h = h_ref[0]                       # (HALO, Cp) bf16
    w0 = w_ref[0]
    w1 = w_ref[1]
    w2 = w_ref[2]

    # Per-tap MXU matmuls over the main tile (K = Cp, f32 accumulation).
    z0 = jnp.dot(x, w0, preferred_element_type=jnp.float32)       # (T, Cp)
    z1 = jnp.dot(x, w1, preferred_element_type=jnp.float32)
    z2 = jnp.dot(x, w2, preferred_element_type=jnp.float32)
    # Halo contributions (only the first 1-2 rows are used); tiny MXU matmuls.
    th1 = jnp.dot(h, w1, preferred_element_type=jnp.float32)      # (HALO, Cp)
    th2 = jnp.dot(h, w2, preferred_element_type=jnp.float32)

    # Conv output row i (padded-row indexing): acc[i] = z0[i] + z1[i+1] + z2[i+2] + bias.
    # Shifts are applied on the f32 results, not the bf16 inputs.
    z1s = jnp.concatenate([z1[1:, :], th1[0:1, :]], axis=0)       # (T, Cp)
    z2s = jnp.concatenate([z2[2:, :], th2[0:2, :]], axis=0)       # (T, Cp)
    acc = z0 + z1s + z2s + b_ref[...]

    # MaxPool1d(2) then ReLU (PyTorch order), single lane-dense store.
    # (The reshape splits only the sublane dim: (T, Cp) -> (T//2, 2, Cp).)
    pooled = jnp.max(acc.reshape(t // 2, 2, cp), axis=1)
    o_ref[0] = jnp.maximum(pooled, 0.0).astype(o_ref.dtype)


def _round_up(v, m):
    return ((v + m - 1) // m) * m


def _tpu_vmem_capacity_bytes():
    """Physical per-core VMEM (v5e/v6e: 128 MiB, v7x: 64 MiB); conservative fallback."""
    try:
        return int(pltpu.get_tpu_info().vmem_capacity_bytes)
    except Exception:
        return 64 * 1024 * 1024


def _const_block_spec(shape, index_map):
    """BlockSpec for operands with a constant index_map (weights / bias).

    Requests single buffering so the pipeline does not double the weight-slab VMEM
    footprint (matters for large C on v7x); falls back if pipeline_mode / Buffered(1)
    is unavailable in the running JAX.
    """
    try:
        return pl.BlockSpec(shape, index_map, pipeline_mode=pl.Buffered(1))
    except Exception:
        return pl.BlockSpec(shape, index_map)


def _choose_tile_l(l, cp, n, out_elt_bytes, vmem_limit_bytes):
    """Largest multiple-of-16 TILE_L whose double-buffered streams fit the VMEM budget."""
    # Budget the weight slab as double-buffered (conservative: also covers the fallback
    # path where pl.Buffered(1) is unavailable), plus a fixed margin for scratch/regs.
    weight_bytes = 2 * (3 * cp * cp * 2 + cp * 4)
    margin = 4 * 1024 * 1024
    avail = max(vmem_limit_bytes - weight_bytes - margin, 2 * 1024 * 1024)
    # Per grid step (double-buffered): x tile (bf16) + halo (bf16) + out tile.
    bytes_per_row = cp * 2 + (cp * out_elt_bytes) // 2
    tile_cap = (avail // 2 - HALO * cp * 2) // max(bytes_per_row, 1)
    tile_l = max(16, (tile_cap // 16) * 16)
    tile_l = min(tile_l, MAX_TILE_L, _round_up(l, 16))
    # Keep enough grid steps for both v7x TensorCores and for pipeline depth.
    min_tiles = max(1, -(-8 // max(n, 1)))                       # ~8 steps per chip
    tile_for_steps = _round_up(max(1, -(-l // min_tiles)), 16)
    tile_l = min(tile_l, max(tile_for_steps, 16))
    # The halo index_map and the pooling reshape both rely on this.
    assert tile_l % HALO == 0 and tile_l % 2 == 0, tile_l
    return tile_l


def conv_block_forward_nlc(x_nlc, weight, bias, *, compute_dtype=jnp.bfloat16, out_dtype=None):
    """ConvBlock forward on channels-last input.

    x_nlc: (N, L, C); weight: (C, C, 3) (PyTorch Conv1d layout); bias: (C,).
    Returns (N, L//2, C) in `out_dtype` (default: bf16 to halve the kernel's HBM write;
    pass jnp.float32 for a full-precision interface).
    """
    n, l, c = x_nlc.shape
    assert weight.shape == (c, c, 3), weight.shape
    assert bias.shape == (c,), bias.shape
    assert l >= 2, "MaxPool1d(2) needs L >= 2"
    if out_dtype is None:
        out_dtype = compute_dtype
    out_elt = jnp.dtype(out_dtype).itemsize
    l_out = l // 2

    cp = _round_up(c, 128)                                   # lane-dense channel dim
    vmem_cap = _tpu_vmem_capacity_bytes()                    # generation-aware budget
    vmem_limit = min(int(vmem_cap * 0.7), 96 * 1024 * 1024)
    tile_l = _choose_tile_l(l, cp, n, out_elt, vmem_limit)
    num_tiles = -(-l // tile_l)
    l_t = num_tiles * tile_l
    halo_blocks_per_tile = tile_l // HALO

    # One fused pad + cast producer pass:
    #   1 zero row on the left ('same' pad), zeros on the right up to l_t + HALO rows,
    #   channels zero-padded to Cp, cast to bf16 for the MXU.
    # TODO(synk): fold this 'same'/tile/channel padding into the kernel (predicated
    # left/right halo contributions + row masks) so layout-native bf16 callers skip
    # this whole-array HBM pass entirely.
    x_pad = jnp.pad(x_nlc.astype(compute_dtype),
                    ((0, 0), (1, l_t + HALO - 1 - l), (0, cp - c)))      # (N, l_t+HALO, Cp)

    # Weights: (C_out, C_in, 3) -> tap-major (3, Cp_in, Cp_out), bf16.
    w_kic = jnp.transpose(weight, (2, 1, 0))
    w_kic = jnp.pad(w_kic, ((0, 0), (0, cp - c), (0, cp - c))).astype(compute_dtype)
    b2d = jnp.pad(bias, (0, cp - c)).reshape(1, cp).astype(jnp.float32)
    # TODO(synk): for very large C (3*Cp*Cp bf16 > ~1/4 of VMEM, ~Cp>=2048 on v7x) add an
    # input-channel grid axis ("arbitrary") with an f32 accumulator scratch instead of
    # keeping the whole weight slab VMEM-resident.

    out_nlc = pl.pallas_call(
        conv_pool_relu_kernel,
        out_shape=jax.ShapeDtypeStruct((n, l_t // 2, cp), out_dtype),
        grid_spec=pltpu.PrefetchScalarGridSpec(
            num_scalar_prefetch=0,
            grid=(n, num_tiles),
            in_specs=[
                # main tile: padded rows [li*tile_l, (li+1)*tile_l)
                pl.BlockSpec((1, tile_l, cp), lambda nb, li: (nb, li, 0)),
                # halo tile: padded rows [(li+1)*tile_l, (li+1)*tile_l + HALO)
                pl.BlockSpec((1, HALO, cp),
                             lambda nb, li: (nb, (li + 1) * halo_blocks_per_tile, 0)),
                _const_block_spec((3, cp, cp), lambda nb, li: (0, 0, 0)),
                _const_block_spec((1, cp), lambda nb, li: (0, 0)),
            ],
            out_specs=pl.BlockSpec((1, tile_l // 2, cp), lambda nb, li: (nb, li, 0)),
        ),
        compiler_params=pltpu.CompilerParams(
            dimension_semantics=("parallel", "parallel"),
            vmem_limit_bytes=int(vmem_limit),
        ),
    )(x_pad, x_pad, w_kic, b2d)

    return out_nlc[:, :l_out, :c]                            # drop tile/channel padding


def conv_block_forward(x_ncl, weight, bias, **kwargs):
    """PyTorch-layout ConvBlock forward: (N, C, L) -> (N, C, L//2).

    If the surrounding model can keep channels-last activations, call
    conv_block_forward_nlc directly and drop both transposes (two full-tensor HBM
    passes on an otherwise memory-bound op).
    """
    out_nlc = conv_block_forward_nlc(jnp.transpose(x_ncl, (0, 2, 1)), weight, bias, **kwargs)
    return jnp.transpose(out_nlc, (0, 2, 1))


def reference_forward(x_ncl, weight, bias):
    """Pure-JAX f32 reference matching the PyTorch module semantics."""
    y = lax.conv_general_dilated(
        x_ncl, weight, window_strides=(1,), padding="SAME",
        dimension_numbers=("NCH", "OIH", "NCH"),
        precision=lax.Precision.HIGHEST)
    y = y + bias[None, :, None]
    n, c, l = y.shape
    lh = l // 2
    y = y[:, :, :2 * lh].reshape(n, c, lh, 2).max(axis=-1)
    return jnp.maximum(y, 0.0)


if __name__ == "__main__":
    N, C, L = 2, 4, 16

    key = jax.random.PRNGKey(0)
    kx, kw, kb = jax.random.split(key, 3)
    x = jax.random.normal(kx, (N, C, L), jnp.float32)
    # Deterministic synthetic parameters (shapes match nn.Conv1d(C, C, 3)).
    weight = jax.random.normal(kw, (C, C, 3), jnp.float32) * 0.1
    bias = jax.random.normal(kb, (C,), jnp.float32) * 0.1

    # jit so the wrapper glue (transpose + pad + cast) fuses into a single HBM pass.
    fwd_f32 = jax.jit(functools.partial(conv_block_forward, out_dtype=jnp.float32))
    fwd_bf16 = jax.jit(conv_block_forward)

    out = jax.block_until_ready(fwd_f32(x, weight, bias))
    assert out.shape == (N, C, L // 2), out.shape

    # Exactness check vs a reference fed the same bf16-rounded operands
    # (kernel accumulates in f32, so this should agree to f32 precision).
    xq = x.astype(jnp.bfloat16).astype(jnp.float32)
    wq = weight.astype(jnp.bfloat16).astype(jnp.float32)
    ref_q = jax.block_until_ready(reference_forward(xq, wq, bias))
    assert jnp.allclose(out, ref_q, atol=1e-4, rtol=1e-4), "mismatch vs bf16-rounded reference"

    # Sanity check vs the full-precision f32 reference (bf16 MXU inputs => loose tol).
    ref = jax.block_until_ready(reference_forward(x, weight, bias))
    assert jnp.allclose(out, ref, atol=5e-2, rtol=5e-2), "mismatch vs f32 reference"

    # Default path: bf16 output (halves the kernel's HBM write); loose tolerance.
    out_bf16 = jax.block_until_ready(fwd_bf16(x, weight, bias))
    assert out_bf16.shape == (N, C, L // 2), out_bf16.shape
    assert out_bf16.dtype == jnp.bfloat16
    assert jnp.allclose(out_bf16.astype(jnp.float32), ref, atol=5e-2, rtol=5e-2), \
        "mismatch vs f32 reference (bf16 output path)"

    print("KERNEL_OK")
</pallas_src>

<mosaic_0001>
module attributes {stable_mosaic.version = 11 : i64} {
  func.func @conv_pool_relu_kernel(%arg0: i32, %arg1: i32, %arg2: memref<1x16x128xbf16, #tpu.memory_space<vmem>>, %arg3: memref<1x16x128xbf16, #tpu.memory_space<vmem>>, %arg4: memref<3x128x128xbf16, #tpu.memory_space<vmem>>, %arg5: memref<1x128xf32, #tpu.memory_space<vmem>>, %arg6: memref<1x8x128xf32, #tpu.memory_space<vmem>>) attributes {dimension_semantics = [#tpu.dimension_semantics<parallel>, #tpu.dimension_semantics<parallel>], iteration_bounds = array<i64: 2, 1>, scalar_prefetch = 0 : i64, scratch_operands = 0 : i64, tpu.core_type = #tpu.core_type<tc>, window_params = [{transform_indices = @transform_0, window_bounds = array<i64: 1, 16, 128>}, {transform_indices = @transform_1, window_bounds = array<i64: 1, 16, 128>}, {pipeline_mode = #tpu.pipeline_mode<synchronous>, transform_indices = @transform_2, window_bounds = array<i64: 3, 128, 128>}, {pipeline_mode = #tpu.pipeline_mode<synchronous>, transform_indices = @transform_3, window_bounds = array<i64: 1, 128>}, {transform_indices = @transform_4, window_bounds = array<i64: 1, 8, 128>}]} {
    %c0 = arith.constant 0 : index
    %c0_0 = arith.constant 0 : index
    %c0_1 = arith.constant 0 : index
    %0 = vector.load %arg2[%c0, %c0_0, %c0_1] : memref<1x16x128xbf16, #tpu.memory_space<vmem>>, vector<1x16x128xbf16>
    %1 = vector.shape_cast %0 : vector<1x16x128xbf16> to vector<16x128xbf16>
    %c0_2 = arith.constant 0 : index
    %c0_3 = arith.constant 0 : index
    %c0_4 = arith.constant 0 : index
    %2 = vector.load %arg3[%c0_2, %c0_3, %c0_4] : memref<1x16x128xbf16, #tpu.memory_space<vmem>>, vector<1x16x128xbf16>
    %3 = vector.shape_cast %2 : vector<1x16x128xbf16> to vector<16x128xbf16>
    %c0_5 = arith.constant 0 : index
    %c0_6 = arith.constant 0 : index
    %c0_7 = arith.constant 0 : index
    %4 = vector.load %arg4[%c0_5, %c0_6, %c0_7] : memref<3x128x128xbf16, #tpu.memory_space<vmem>>, vector<1x128x128xbf16>
    %5 = vector.shape_cast %4 : vector<1x128x128xbf16> to vector<128x128xbf16>
    %c1 = arith.constant 1 : index
    %c0_8 = arith.constant 0 : index
    %c0_9 = arith.constant 0 : index
    %6 = vector.load %arg4[%c1, %c0_8, %c0_9] : memref<3x128x128xbf16, #tpu.memory_space<vmem>>, vector<1x128x128xbf16>
    %7 = vector.shape_cast %6 : vector<1x128x128xbf16> to vector<128x128xbf16>
    %c2 = arith.constant 2 : index
    %c0_10 = arith.constant 0 : index
    %c0_11 = arith.constant 0 : index
    %8 = vector.load %arg4[%c2, %c0_10, %c0_11] : memref<3x128x128xbf16, #tpu.memory_space<vmem>>, vector<1x128x128xbf16>
    %9 = vector.shape_cast %8 : vector<1x128x128xbf16> to vector<128x128xbf16>
    %cst = arith.constant dense<0.000000e+00> : vector<16x128xf32>
    %10 = tpu.matmul %1, %5, %cst {dimension_numbers = #tpu.dot_dimension_numbers<[1], [0], [0], [1], [0, 0, 1, 1], [], []>} : vector<16x128xbf16>, vector<128x128xbf16>, vector<16x128xf32> -> vector<16x128xf32>
    %cst_12 = arith.constant dense<0.000000e+00> : vector<16x128xf32>
    %11 = tpu.matmul %1, %7, %cst_12 {dimension_numbers = #tpu.dot_dimension_numbers<[1], [0], [0], [1], [0, 0, 1, 1], [], []>} : vector<16x128xbf16>, vector<128x128xbf16>, vector<16x128xf32> -> vector<16x128xf32>
    %cst_13 = arith.constant dense<0.000000e+00> : vector<16x128xf32>
    %12 = tpu.matmul %1, %9, %cst_13 {dimension_numbers = #tpu.dot_dimension_numbers<[1], [0], [0], [1], [0, 0, 1, 1], [], []>} : vector<16x128xbf16>, vector<128x128xbf16>, vector<16x128xf32> -> vector<16x128xf32>
    %cst_14 = arith.constant dense<0.000000e+00> : vector<16x128xf32>
    %13 = tpu.matmul %3, %7, %cst_14 {dimension_numbers = #tpu.dot_dimension_numbers<[1], [0], [0], [1], [0, 0, 1, 1], [], []>} : vector<16x128xbf16>, vector<128x128xbf16>, vector<16x128xf32> -> vector<16x128xf32>
    %cst_15 = arith.constant dense<0.000000e+00> : vector<16x128xf32>
    %14 = tpu.matmul %3, %9, %cst_15 {dimension_numbers = #tpu.dot_dimension_numbers<[1], [0], [0], [1], [0, 0, 1, 1], [], []>} : vector<16x128xbf16>, vector<128x128xbf16>, vector<16x128xf32> -> vector<16x128xf32>
    %15 = vector.extract_strided_slice %11 {offsets = [1, 0], sizes = [15, 128], strides = [1, 1]} : vector<16x128xf32> to vector<15x128xf32>
    %16 = vector.extract_strided_slice %13 {offsets = [0, 0], sizes = [1, 128], strides = [1, 1]} : vector<16x128xf32> to vector<1x128xf32>
    %17 = tpu.concatenate %15, %16 in 0 : vector<15x128xf32>, vector<1x128xf32> -> vector<16x128xf32>
    %18 = vector.extract_strided_slice %12 {offsets = [2, 0], sizes = [14, 128], strides = [1, 1]} : vector<16x128xf32> to vector<14x128xf32>
    %19 = vector.extract_strided_slice %14 {offsets = [0, 0], sizes = [2, 128], strides = [1, 1]} : vector<16x128xf32> to vector<2x128xf32>
    %20 = tpu.concatenate %18, %19 in 0 : vector<14x128xf32>, vector<2x128xf32> -> vector<16x128xf32>
    %21 = arith.addf %10, %17 : vector<16x128xf32>
    %22 = arith.addf %21, %20 : vector<16x128xf32>
    %c0_16 = arith.constant 0 : index
    %c0_17 = arith.constant 0 : index
    %23 = vector.load %arg5[%c0_16, %c0_17] : memref<1x128xf32, #tpu.memory_space<vmem>>, vector<1x128xf32>
    %24 = vector.broadcast %23 : vector<1x128xf32> to vector<16x128xf32>
    %25 = arith.addf %22, %24 : vector<16x128xf32>
    %26 = vector.shape_cast %25 : vector<16x128xf32> to vector<8x2x128xf32>
    %cst_18 = arith.constant dense<0xFF800000> : vector<8x128xf32>
    %27 = vector.multi_reduction <maximumf>, %26, %cst_18 [1] : vector<8x2x128xf32> to vector<8x128xf32>
    %cst_19 = arith.constant 0.000000e+00 : f32
    %28 = vector.broadcast %cst_19 : f32 to vector<8x128xf32>
    %29 = arith.maximumf %27, %28 : vector<8x128xf32>
    %c0_20 = arith.constant 0 : index
    %c0_21 = arith.constant 0 : index
    %c0_22 = arith.constant 0 : index
    %30 = vector.load %arg6[%c0_20, %c0_21, %c0_22] : memref<1x8x128xf32, #tpu.memory_space<vmem>>, vector<1x8x128xf32>
    %31 = vector.shape_cast %30 : vector<1x8x128xf32> to vector<8x128xf32>
    %32 = vector.shape_cast %29 : vector<8x128xf32> to vector<1x8x128xf32>
    tpu.vector_store %arg6[%c0_20, %c0_21, %c0_22], %32 {strides = array<i32>} : memref<1x8x128xf32, #tpu.memory_space<vmem>>, vector<1x8x128xf32>,
    return
  }
  func.func @transform_0(%arg0: i32, %arg1: i32) -> (i32, i32, i32) {
    %c0_i32 = arith.constant 0 : i32
    %c0_i32_0 = arith.constant 0 : i32
    return %arg0, %arg1, %c0_i32 : i32, i32, i32
  }
  func.func @transform_1(%arg0: i32, %arg1: i32) -> (i32, i32, i32) {
    %c1_i32 = arith.constant 1 : i32
    %0 = arith.addi %arg1, %c1_i32 : i32
    %c1_i32_0 = arith.constant 1 : i32
    %1 = arith.muli %0, %c1_i32_0 : i32
    %c0_i32 = arith.constant 0 : i32
    %c0_i32_1 = arith.constant 0 : i32
    return %arg0, %1, %c0_i32 : i32, i32, i32
  }
  func.func @transform_2(%arg0: i32, %arg1: i32) -> (i32, i32, i32) {
    %c0_i32 = arith.constant 0 : i32
    %c0_i32_0 = arith.constant 0 : i32
    %c0_i32_1 = arith.constant 0 : i32
    %c0_i32_2 = arith.constant 0 : i32
    return %c0_i32, %c0_i32_0, %c0_i32_1 : i32, i32, i32
  }
  func.func @transform_3(%arg0: i32, %arg1: i32) -> (i32, i32) {
    %c0_i32 = arith.constant 0 : i32
    %c0_i32_0 = arith.constant 0 : i32
    %c0_i32_1 = arith.constant 0 : i32
    return %c0_i32, %c0_i32_0 : i32, i32
  }
  func.func @transform_4(%arg0: i32, %arg1: i32) -> (i32, i32, i32) {
    %c0_i32 = arith.constant 0 : i32
    %c0_i32_0 = arith.constant 0 : i32
    return %arg0, %arg1, %c0_i32 : i32, i32, i32
  }
}

</mosaic_0001>

<bundles_post_ra>
// kernel: conv_block_forward.1
= control target key start
LH: loop header
LB: loop body
LE: loop exit
PB: predicated region body
PF: predicated region fallthrough
CT: control target
= control target key end

     0   :  { %s1277_s15 = smov 0   ;;  %s1279_s16 = smov 0   ;;  %s1471_s0 = inlined_call_operand.vmem [shape: bf16[2,32,128], index: 0, kind: input, shape index: {}, may-alias: {0,1}]   ;;  %s1472_s1 = inlined_call_operand.vmem [shape: bf16[2,32,128], index: 1, kind: input, shape index: {}, may-alias: {0,1}]   ;;  %s1473_s2 = inlined_call_operand.vmem [shape: bf16[3,128,128], index: 2, kind: input, shape index: {}]   ;;  %s1474_s3 = inlined_call_operand.vmem [shape: f32[1,128], index: 3, kind: input, shape index: {}]   ;;  %s1475_s4 = inlined_call_operand.vmem [shape: f32[2,8,128], index: 4, kind: output, shape index: {}]  }
   0x1   :  { %s1281_s17 = smov 0  }
   0x2 LB: > { %s26_s18 = sadd.s32 1, %s1243_s16  ;;  %p956_p0 = scmp.ge.s32.totalorder %s1247_s17, 1  ;;  %s1247_s17 = sphi %s1281_s17, %s14_s17   ;;  %s1243_s16 = sphi %s1279_s16, %s1477_s16   ;;  %s1239_s15 = sphi %s1277_s15, %s1476_s15  }
   0x3   : > { %p28_p1 = scmp.ge.s32.totalorder %s26_s18, 2  ;;  %p204_p2 = scmp.lt.s32.totalorder %s1247_s17, 3 }
   0x5   : > { %s1479_s18 = smov (%p28_p1, %s26_s18), 0  ;;  %p205_p3 = pnand %p956_p0, %p204_p2 }
   0x6   : > { %v1199_v0 = vld [vmem:[%s1473_s2 + $0x40] sm:$0xff] (!%p205_p3)   ;;  %v1249_v1 = vmov (!%p205_p3), 0.0   ;;  %v1303_v2 = vld [vmem:[%s1473_s2 + $0x48] sm:$0xff] (!%p205_p3)   ;;  %vm1250_vm0 = vmmov (!%p205_p3), 0   ;;  %p247_p4 = scmp.lt.s32.totalorder (!%p205_p3), %s1239_s15, 1  ;;  %v1202_v5 = vld [vmem:[%s1473_s2 + $0x50] sm:$0xff] (!%p205_p3)   ;;  %v730_v55 = vlaneseq (!%p205_p3) }
   0x7   : > { %208 = sbr.rel (%p205_p3) target bundleno = 349 (0x15d), region = 36  ;;  %1072 = vmatprep.subr.bf16.mxu0 (!%p205_p3), %v1249_v1  ;;  %1092 = vmatprep.subr.bf16.mxu1 (!%p205_p3), %v1249_v1  ;;  %v1201_v3 = vld [vmem:[%s1473_s2 + $0x80] sm:$0xff] (!%p205_p3)   ;;  %v1203_v4 = vld [vmem:[%s1473_s2 + $0x88] sm:$0xff] (!%p205_p3)   ;;  %v1205_v6 = vld [vmem:[%s1473_s2 + $0x90] sm:$0xff] (!%p205_p3)   ;;  %vm602_vm1 = vcmask (!%p205_p3), 1046528   ;;  %vm614_vm2 = vcmask (!%p205_p3), 1045504  }
   0x8   : > { %1073 = vmatpush3.bf16.msra.mxu0 (!%p205_p3), %v1199_v0  ;;  %1088 = vmatprep.mubr.msk.bf16.mxu0 (!%p205_p3), %vm1250_vm0, %v1249_v1  ;;  %v1204_v7 = vld [vmem:[%s1473_s2 + $0x58] sm:$0xff] (!%p205_p3)   ;;  %v1206_v9 = vld [vmem:[%s1473_s2 + $0x60] sm:$0xff] (!%p205_p3)   ;;  %v1208_v11 = vld [vmem:[%s1473_s2 + $0x68] sm:$0xff] (!%p205_p3)   ;;  %v1251_v53 = vmov (!%p205_p3), 1983009808   ;;  %v731_v57 = vshrl.u32 (!%p205_p3), %v730_v55, 7 }
   0x9   : > { %1074 = vmatprep.subr.bf16.mxu0 (!%p205_p3), %v1249_v1  ;;  %1108 = vmatprep.mubr.msk.bf16.mxu1 (!%p205_p3), %vm1250_vm0, %v1249_v1  ;;  %v1207_v8 = vld [vmem:[%s1473_s2 + $0x98] sm:$0xff] (!%p205_p3)   ;;  %v1209_v10 = vld [vmem:[%s1473_s2 + $0xa0] sm:$0xff] (!%p205_p3)   ;;  %v1211_v12 = vld [vmem:[%s1473_s2 + $0xa8] sm:$0xff] (!%p205_p3)   ;;  %v728_v54 = vunpack.c.l.s4 (!%p205_p3), %v1251_v53  ;;  %vm768_vm3 = vcmask (!%p205_p3), 1041408   ;;  %vm841_vm4 = vcmask (!%p205_p3), 1041409   ;;  %vm843_vm5 = vcmask (!%p205_p3), 1042434  }
   0xa   : > { %1093 = vmatpush3.bf16.msra.mxu1 (!%p205_p3), %v1201_v3  ;;  %v1210_v13 = vld [vmem:[%s1473_s2 + $0x70] sm:$0xff] (!%p205_p3)   ;;  %v1212_v15 = vld [vmem:[%s1473_s2 + $0x78] sm:$0xff] (!%p205_p3)   ;;  %v1217_v19 = vld [vmem:[%s1473_s2] sm:$0xff] (!%p205_p3)   ;;  %vm845_vm6 = vcmask (!%p205_p3), 1043459   ;;  %vm847_vm7 = vcmask (!%p205_p3), 1044484   ;;  %vm849_vm8 = vcmask (!%p205_p3), 1045509  }
   0xb   : > { %1094 = vmatprep.subr.bf16.mxu1 (!%p205_p3), %v1249_v1  ;;  %v1213_v14 = vld [vmem:[%s1473_s2 + $0xb0] sm:$0xff] (!%p205_p3)   ;;  %v1215_v16 = vld [vmem:[%s1473_s2 + $0xb8] sm:$0xff] (!%p205_p3)   ;;  %v1218_v20 = vld [vmem:[%s1473_s2 + $0x8] sm:$0xff] (!%p205_p3)   ;;  %v729_v56 = vunpack.c.0.s8 (!%p205_p3), %v728_v54  ;;  %vm851_vm9 = vcmask (!%p205_p3), 1046534   ;;  %vm853_vm10 = vcmask (!%p205_p3), 1047559  }
   0xc   : > { %1075 = vmatpush3.bf16.msra.mxu0 (!%p205_p3), %v1303_v2  ;;  %v1219_v21 = vld [vmem:[%s1473_s2 + $0x10] sm:$0xff] (!%p205_p3)   ;;  %v1220_v22 = vld [vmem:[%s1473_s2 + $0x18] sm:$0xff] (!%p205_p3)   ;;  %v1221_v23 = vld [vmem:[%s1473_s2 + $0x20] sm:$0xff] (!%p205_p3)  }
   0xd   : > { %1076 = vmatprep.subr.bf16.mxu0 (!%p205_p3), %v1249_v1  ;;  %v1222_v24 = vld [vmem:[%s1473_s2 + $0x28] sm:$0xff] (!%p205_p3)   ;;  %v1223_v25 = vld [vmem:[%s1473_s2 + $0x30] sm:$0xff] (!%p205_p3)   ;;  %v1224_v26 = vld [vmem:[%s1473_s2 + $0x38] sm:$0xff] (!%p205_p3)  }
   0xe   : > { %s1481_s15 = smov (!%p247_p4, %s1239_s15), 1  ;;  %1095 = vmatpush3.bf16.msra.mxu1 %v1203_v4  ;;  %v1020_v61 = vld [vmem:[%s1474_s3] ss:$0 sm:$0xff] }
   0xf   : > { %1096 = vmatprep.subr.bf16.mxu1 %v1249_v1  ;;  %s1023_s7 = sshll.u32 %s1481_s15, 4  ;;  %s961_s9 = sshll.u32 %s1481_s15, 3 }
  0x10   : > { %1077 = vmatpush3.bf16.msra.mxu0 %v1202_v5  ;;  %s1337_s10 = sadd.s32 8, %s1023_s7  ;;  %s254_s19 = scalar_lea.vmem %s1471_s0, %s1023_s7 }
  0x11   : > { %1078 = vmatprep.subr.bf16.mxu0 %v1249_v1  ;;  %s265_s24 = scalar_lea.vmem %s1472_s1, %s1337_s10  ;;  %v1377_v17 = vld [vmem:[%s254_s19] sm:$0xff]   ;;  %s274_s13 = scalar_lea.vmem %s1475_s4, %s961_s9 }
  0x12   : > { %1097 = vmatpush3.bf16.msra.mxu1 %v1205_v6  ;;  %v1216_v18 = vld [vmem:[%s265_s24] sm:$0xff]  }
  0x13   : > { %1098 = vmatprep.subr.bf16.mxu1 %v1249_v1 }
  0x14   : > { %1079 = vmatpush3.bf16.msra.mxu0 %v1204_v7 }
  0x15   : > { %1080 = vmatprep.subr.bf16.mxu0 %v1249_v1 }
  0x16   : > { %1099 = vmatpush3.bf16.msra.mxu1 %v1207_v8 }
  0x17   : > { %1100 = vmatprep.subr.bf16.mxu1 %v1249_v1 }
  0x18   : > { %1081 = vmatpush3.bf16.msra.mxu0 %v1206_v9 }
  0x19   : > { %1082 = vmatprep.subr.bf16.mxu0 %v1249_v1 }
  0x1a   : > { %1101 = vmatpush3.bf16.msra.mxu1 %v1209_v10 }
  0x1b   : > { %1102 = vmatprep.subr.bf16.mxu1 %v1249_v1 }
  0x1c   : > { %1083 = vmatpush3.bf16.msra.mxu0 %v1208_v11 }
  0x1d   : > { %1084 = vmatprep.subr.bf16.mxu0 %v1249_v1 }
  0x1e   : > { %1103 = vmatpush3.bf16.msra.mxu1 %v1211_v12 }
  0x1f   : > { %1104 = vmatprep.subr.bf16.mxu1 %v1249_v1 }
  0x20   : > { %1085 = vmatpush3.bf16.msra.mxu0 %v1210_v13 }
  0x21   : > { %1086 = vmatprep.subr.bf16.mxu0 %v1249_v1 }
  0x22   : > { %1105 = vmatpush3.bf16.msra.mxu1 %v1213_v14 }
  0x23   : > { %1106 = vmatprep.subr.bf16.mxu1 %v1249_v1 }
  0x24   : > { %1087 = vmatpush3.bf16.msra.mxu0 %v1212_v15 }
  0x25   : > { %1112 = vmatprep.subr.bf16.mxu0 %v1249_v1 }
  0x26   : > { %1107 = vmatpush3.bf16.msra.mxu1 %v1215_v16 }
  0x27   : > { %1089 = vmatmul.mubr.bf16.vlgmr.msra.gmra.mrb[0].mxu0 %v1377_v17  ;;  %1132 = vmatprep.subr.bf16.mxu1 %v1249_v1 }
  0x28   : > { %1113 = vmatpush3.bf16.msra.mxu0 %v1199_v0  ;;  %1128 = vmatprep.mubr.msk.bf16.mxu0 %vm1250_vm0, %v1249_v1  ;;  %v732_v0 = vsub.s32 %v729_v56, %v731_v57 }
  0x29   : > { %1114 = vmatprep.subr.bf16.mxu0 %v1249_v1  ;;  %1109 = vmatmul.mubr.bf16.vlgmr.msra.gmra.mrb[0].mxu1 %v1377_v17 }
  0x2a   : > { %1133 = vmatpush3.bf16.msra.mxu1 %v1201_v3  ;;  %1148 = vmatprep.mubr.msk.bf16.mxu1 %vm1250_vm0, %v1249_v1 }
  0x2b   : > { %1134 = vmatprep.subr.bf16.mxu1 %v1249_v1 }
  0x2c   : > { %1115 = vmatpush3.bf16.msra.mxu0 %v1303_v2 }
  0x2d   : > { %1116 = vmatprep.subr.bf16.mxu0 %v1249_v1 }
  0x2e   : > { %1135 = vmatpush3.bf16.msra.mxu1 %v1203_v4 }
  0x2f   : > { %1136 = vmatprep.subr.bf16.mxu1 %v1249_v1 }
  0x30   : > { %1117 = vmatpush3.bf16.msra.mxu0 %v1202_v5 }
  0x31   : > { %1118 = vmatprep.subr.bf16.mxu0 %v1249_v1 }
  0x32   : > { %1137 = vmatpush3.bf16.msra.mxu1 %v1205_v6 }
  0x33   : > { %1138 = vmatprep.subr.bf16.mxu1 %v1249_v1 }
  0x34   : > { %1119 = vmatpush3.bf16.msra.mxu0 %v1204_v7 }
  0x35   : > { %1120 = vmatprep.subr.bf16.mxu0 %v1249_v1 }
  0x36   : > { %1139 = vmatpush3.bf16.msra.mxu1 %v1207_v8 }
  0x37   : > { %1140 = vmatprep.subr.bf16.mxu1 %v1249_v1 }
  0x38   : > { %1121 = vmatpush3.bf16.msra.mxu0 %v1206_v9 }
  0x39   : > { %1122 = vmatprep.subr.bf16.mxu0 %v1249_v1 }
  0x3a   : > { %1141 = vmatpush3.bf16.msra.mxu1 %v1209_v10 }
  0x3b   : > { %1142 = vmatprep.subr.bf16.mxu1 %v1249_v1 }
  0x3c   : > { %1123 = vmatpush3.bf16.msra.mxu0 %v1208_v11 }
  0x3d   : > { %1124 = vmatprep.subr.bf16.mxu0 %v1249_v1 }
  0x3e   : > { %1143 = vmatpush3.bf16.msra.mxu1 %v1211_v12 }
  0x3f   : > { %1144 = vmatprep.subr.bf16.mxu1 %v1249_v1 }
  0x40   : > { %1125 = vmatpush3.bf16.msra.mxu0 %v1210_v13 }
  0x41   : > { %1126 = vmatprep.subr.bf16.mxu0 %v1249_v1 }
  0x42   : > { %1145 = vmatpush3.bf16.msra.mxu1 %v1213_v14 }
  0x43   : > { %1146 = vmatprep.subr.bf16.mxu1 %v1249_v1 }
  0x44   : > { %1127 = vmatpush3.bf16.msra.mxu0 %v1212_v15 }
  0x45   : > { %1152 = vmatprep.subr.bf16.mxu0 %v1249_v1 }
  0x46   : > { %1147 = vmatpush3.bf16.msra.mxu1 %v1215_v16 }
  0x47   : > { %1129 = vmatmul.mubr.bf16.vlgmr.msra.gmra.mrb[4].mxu0 %v1216_v18 }
  0x48   : > { %1153 = vmatpush3.bf16.msra.mxu0 %v1217_v19  ;;  %1168 = vmatprep.mubr.msk.bf16.mxu0 %vm1250_vm0, %v1249_v1 }
  0x49   : > { %1149 = vmatmul.mubr.bf16.vlgmr.msra.gmra.mrb[4].mxu1 %v1216_v18  ;;  %1154 = vmatprep.subr.bf16.mxu0 %v1249_v1 }
  0x4c   : > { %1155 = vmatpush3.bf16.msra.mxu0 %v1218_v20 }
  0x4d   : > { %1156 = vmatprep.subr.bf16.mxu0 %v1249_v1 }
  0x50   : > { %1157 = vmatpush3.bf16.msra.mxu0 %v1219_v21 }
  0x51   : > { %1158 = vmatprep.subr.bf16.mxu0 %v1249_v1 }
  0x54   : > { %1159 = vmatpush3.bf16.msra.mxu0 %v1220_v22 }
  0x55   : > { %1160 = vmatprep.subr.bf16.mxu0 %v1249_v1 }
  0x58   : > { %1161 = vmatpush3.bf16.msra.mxu0 %v1221_v23 }
  0x59   : > { %1162 = vmatprep.subr.bf16.mxu0 %v1249_v1 }
  0x5c   : > { %1163 = vmatpush3.bf16.msra.mxu0 %v1222_v24 }
  0x5d   : > { %1164 = vmatprep.subr.bf16.mxu0 %v1249_v1 }
  0x60   : > { %1165 = vmatpush3.bf16.msra.mxu0 %v1223_v25 }
  0x61   : > { %1166 = vmatprep.subr.bf16.mxu0 %v1249_v1 }
  0x64   : > { %1167 = vmatpush3.bf16.msra.mxu0 %v1224_v26 }
  0x67   : > { %1169 = vmatmul.mubr.bf16.vlgmr.msra.gmra.mrb[8].mxu0 %v1377_v17 }
  0xfa   : > { %v418_v27 = vpop.f32.mrb[0].mxu0 }
  0xfb   : > { %v603_v28 = vrot.slane %v418_v27, 1  ;;  %v1090_v29 = vpop.f32.mrb[1].mxu0 }
  0xfc   : > { %v421_v30 = vpop.f32.mrb[2].mxu0  ;;  %v507_v31 = vpop.f32.mrb[0].mxu1 }
  0xfd   : > { %v604_v32 = vrot.slane %v421_v30, 1  ;;  %v1091_v33 = vpop.f32.mrb[3].mxu0  ;;  %v615_v34 = vrot.slane %v507_v31, 2  ;;  %v1110_v35 = vpop.f32.mrb[1].mxu1 }
  0xfe   : > { %v510_v36 = vpop.f32.mrb[2].mxu1 }
  0xff   : > { %v616_v37 = vrot.slane %v510_v36, 2  ;;  %v1111_v38 = vpop.f32.mrb[3].mxu1  ;;  %v605_v39 = vsel %vm602_vm1, %v603_v28, %v604_v32 }
 0x101   : > { %v617_v40 = vsel %vm614_vm2, %v615_v34, %v616_v37 }
 0x11a   : > { %v554_v41 = vpop.f32.mrb[4].mxu0 }
 0x11b   : > { %v609_v42 = vrot.slane %v554_v41, 1  ;;  %v1130_v43 = vpop.f32.mrb[5].mxu0 }
 0x11c   : > { %v557_v44 = vpop.f32.mrb[6].mxu0  ;;  %v594_v45 = vpop.f32.mrb[4].mxu1 }
 0x11d   : > { %v1131_v46 = vpop.f32.mrb[7].mxu0  ;;  %v621_v47 = vrot.slane %v594_v45, 2  ;;  %v1150_v48 = vpop.f32.mrb[5].mxu1  ;;  %v611_v49 = vsel %vm602_vm1, %v604_v32, %v609_v42 }
 0x11e   : > { %v597_v50 = vpop.f32.mrb[6].mxu1 }
 0x11f   : > { %v623_v51 = vsel %vm614_vm2, %v616_v37, %v621_v47  ;;  %v1151_v52 = vpop.f32.mrb[7].mxu1 }
 0x13a   : > { %v706_v58 = vpop.f32.mrb[8].mxu0 }
 0x13b   : > { %v707_v59 = vadd.f32 %v706_v58, %v605_v39  ;;  %v1170_v60 = vpop.f32.mrb[9].mxu0 }
 0x13c   : > { %v709_v62 = vpop.f32.mrb[10].mxu0 }
 0x13d   : > { %v713_v63 = vadd.f32 %v707_v59, %v617_v40  ;;  %v710_v1 = vadd.f32 %v709_v62, %v611_v49  ;;  %v1171_v2 = vpop.f32.mrb[11].mxu0 }
 0x13f   : > { %v722_v3 = vadd.f32 %v1020_v61, %v713_v63  ;;  %v714_v4 = vadd.f32 %v710_v1, %v623_v51 }
 0x141   : > { %v726_v5 = vcombine.high %v722_v3, %v722_v3  ;;  %v733_v6 = vrot.slane %v722_v3, %v732_v0  ;;  %v723_v7 = vadd.f32 %v1020_v61, %v714_v4 }
 0x143   : > { %v740_v8 = vrot.slane %v726_v5, %v732_v0  ;;  %v741_v9 = vcombine.high %v733_v6, %v733_v6  ;;  %v769_v10 = vsel %vm768_vm3, %v733_v6, -inf  ;;  %v743_v11 = vcombine.high %v723_v7, %v723_v7 }
 0x144   : > { %v770_v12 = vrot.slane %v769_v10, 4  ;;  %v750_v13 = vrot.slane %v723_v7, %v732_v0 }
 0x145   : > { %v742_v14 = vcombine.high %v740_v8, %v740_v8  ;;  %v776_v15 = vsel %vm768_vm3, %v741_v9, -inf  ;;  %v783_v16 = vsel %vm768_vm3, %v740_v8, -inf  ;;  %v757_v17 = vrot.slane %v743_v11, %v732_v0 }
 0x146   : > { %v771_v18 = vmax.f32 %v769_v10, %v770_v12  ;;  %v777_v19 = vrot.slane %v776_v15, 4  ;;  %v784_v20 = vrot.slane %v783_v16, 4  ;;  %v758_v21 = vcombine.high %v750_v13, %v750_v13 }
 0x147   : > { %v790_v22 = vsel %vm768_vm3, %v742_v14, -inf  ;;  %v759_v23 = vcombine.high %v757_v17, %v757_v17  ;;  %v797_v24 = vsel %vm768_vm3, %v750_v13, -inf  ;;  %v811_v25 = vsel %vm768_vm3, %v757_v17, -inf }
 0x148   : > { %v772_v26 = vrot.slane %v771_v18, 2  ;;  %v778_v27 = vmax.f32 %v776_v15, %v777_v19  ;;  %v785_v28 = vmax.f32 %v783_v16, %v784_v20  ;;  %v791_v29 = vrot.slane %v790_v22, 4 }
 0x149   : > { %v798_v30 = vrot.slane %v797_v24, 4  ;;  %v804_v31 = vsel %vm768_vm3, %v758_v21, -inf  ;;  %v812_v32 = vrot.slane %v811_v25, 4  ;;  %v818_v33 = vsel %vm768_vm3, %v759_v23, -inf }
 0x14a   : > { %v773_v34 = vmax.f32 %v771_v18, %v772_v26  ;;  %v779_v35 = vrot.slane %v778_v27, 2  ;;  %v786_v36 = vrot.slane %v785_v28, 2  ;;  %v792_v37 = vmax.f32 %v790_v22, %v791_v29 }
 0x14b   : > { %v799_v38 = vmax.f32 %v797_v24, %v798_v30  ;;  %v805_v39 = vrot.slane %v804_v31, 4  ;;  %v813_v40 = vmax.f32 %v811_v25, %v812_v32  ;;  %v819_v41 = vrot.slane %v818_v33, 4 }
 0x14c   : > { %v774_v42 = vrot.slane %v773_v34, 1  ;;  %v780_v43 = vmax.f32 %v778_v27, %v779_v35  ;;  %v787_v44 = vmax.f32 %v785_v28, %v786_v36  ;;  %v793_v45 = vrot.slane %v792_v37, 2 }
 0x14d   : > { %v800_v46 = vrot.slane %v799_v38, 2  ;;  %v806_v47 = vmax.f32 %v804_v31, %v805_v39  ;;  %v814_v48 = vrot.slane %v813_v40, 2  ;;  %v820_v49 = vmax.f32 %v818_v33, %v819_v41 }
 0x14e   : > { %v775_v50 = vmax.f32 %v773_v34, %v774_v42  ;;  %v781_v51 = vrot.slane %v780_v43, 1  ;;  %v788_v52 = vrot.slane %v787_v44, 1  ;;  %v794_v53 = vmax.f32 %v792_v37, %v793_v45 }
 0x14f   : > { %v801_v54 = vmax.f32 %v799_v38, %v800_v46  ;;  %v807_v55 = vrot.slane %v806_v47, 2  ;;  %v815_v56 = vmax.f32 %v813_v40, %v814_v48  ;;  %v821_v57 = vrot.slane %v820_v49, 2 }
 0x150   : > { %v782_v58 = vmax.f32 %v780_v43, %v781_v51  ;;  %v789_v59 = vmax.f32 %v787_v44, %v788_v52  ;;  %v795_v60 = vrot.slane %v794_v53, 1  ;;  %v825_v2 = vmax.f32 %v775_v50, 0.0 }
 0x151   : > { %v802_v61 = vrot.slane %v801_v54, 1  ;;  %v808_v62 = vmax.f32 %v806_v47, %v807_v55  ;;  %v816_v63 = vrot.slane %v815_v56, 1  ;;  %v822_v0 = vmax.f32 %v820_v49, %v821_v57 }
 0x152   : > { %v796_v1 = vmax.f32 %v794_v53, %v795_v60  ;;  %v826_v3 = vmax.f32 %v782_v58, 0.0  ;;  %v827_v4 = vmax.f32 %v789_v59, 0.0 }
 0x153   : > { %v803_v5 = vmax.f32 %v801_v54, %v802_v61  ;;  %v809_v6 = vrot.slane %v808_v62, 1  ;;  %v823_v7 = vrot.slane %v822_v0, 1  ;;  %v817_v10 = vmax.f32 %v815_v56, %v816_v63 }
 0x154   : > { %v828_v8 = vmax.f32 %v796_v1, 0.0  ;;  %v842_v9 = vsel %vm841_vm4, %v826_v3, %v825_v2 }
 0x155   : > { %v844_v11 = vsel %vm843_vm5, %v827_v4, %v842_v9  ;;  %v810_v12 = vmax.f32 %v808_v62, %v809_v6  ;;  %v824_v13 = vmax.f32 %v822_v0, %v823_v7  ;;  %v829_v14 = vmax.f32 %v803_v5, 0.0 }
 0x156   : > { %v846_v15 = vsel %vm845_vm6, %v828_v8, %v844_v11  ;;  %v831_v18 = vmax.f32 %v817_v10, 0.0 }
 0x157   : > { %v830_v16 = vmax.f32 %v810_v12, 0.0  ;;  %v848_v17 = vsel %vm847_vm7, %v829_v14, %v846_v15  ;;  %v832_v19 = vmax.f32 %v824_v13, 0.0 }
 0x159   : > { %v850_v20 = vsel %vm849_vm8, %v830_v16, %v848_v17 }
 0x15a   : > { %v852_v21 = vsel %vm851_vm9, %v831_v18, %v850_v20 }
 0x15b   : > { %v854_v22 = vsel %vm853_vm10, %v832_v19, %v852_v21 }
 0x15c   : > { %856 = vst [vmem:[%s274_s13] sm:$0xff] %v854_v22 }
 0x15d PF: > { %s14_s17 = sadd.s32 1, %s1247_s17   ;;  %s1476_s15 = smov %s1243_s16 }
 0x15e   : > { %p11_p5 = scmp.ge.s32.totalorder %s14_s17, 4   ;;  %s1477_s16 = smov %s1479_s18 }
 0x160   :  { %13 = sbr.rel (!%p11_p5) target bundleno = 2 (0x2), region = 71 }

</bundles_post_ra>
